<compile_context>
chip_gen: v7x
topology: tpu7x:2x2x1
jax: 0.10.0
libtpu: 0.0.40
codegen_flags: <defaults>
</compile_context>

<pallas_src>
import numpy as np
import jax
import jax.numpy as jnp
from jax.experimental import pallas as pl
from jax.experimental.pallas import tpu as pltpu


# ------------------------------ VMEM / tiling helpers ---------------------------------

# 48 MiB scoped limit: above the default scoped limits of every generation, below
# v7x's 64 MiB physical VMEM.  The tile picker plans against 40 MiB, leaving
# headroom for Mosaic-internal scratch.
_VMEM_LIMIT_BYTES = 48 << 20
_VMEM_BUDGET_BYTES = 40 << 20


def _choose_tile(total, target, align):
    """Largest divisor of `total` that is <= target, preferring multiples of `align`."""
    if total <= target:
        return total
    t = (target // align) * align
    while t >= align:
        if total % t == 0:
            return t
        t -= align
    # No aligned divisor: fall back to the largest (possibly unaligned) divisor so we
    # never silently exceed the VMEM budget.
    for t in range(min(target, total), 0, -1):
        if total % t == 0:
            return t
    return total


def _pick_h_tile(H, W, C, Ho, Wo, masked):
    """Pick the output-row tile of the fused kernel against an explicit VMEM budget."""
    bf2, f4 = 2, 4
    # Fixed (tile-independent) residents: double-buffered pred/gt feature blocks and Aw^T.
    fixed = 2 * 2 * C * Ho * Wo * bf2            # pf, gf blocks (bf16, 2 buffers each)
    fixed += 2 * Wo * W * bf2                    # Aw^T (bf16, 2 buffers)
    # Per-output-row cost.
    per_row = (
        2 * Ho * bf2                             # Ah rows (bf16, 2 buffers)
        + C * Ho * bf2                           # Ah broadcast to (C, tile_h, Ho)
        + C * Wo * (f4 + bf2)                    # H-interp result (f32) + bf16 copy
        + 6 * C * W * f4                         # upsampled p/g, normalized, diff/square temps (f32)
    )
    if masked:
        per_row += 2 * 2 * W * f4                # pred/gt mask blocks (f32, 2 buffers each)
    avail = _VMEM_BUDGET_BYTES - fixed
    target = max(8, avail // max(per_row, 1))
    return _choose_tile(H, int(target), 8)


def _mosaic_params(semantics):
    return pltpu.CompilerParams(dimension_semantics=semantics,
                                vmem_limit_bytes=_VMEM_LIMIT_BYTES)


# ------------------------------ Pallas kernels ----------------------------------

def _conv_matmul_kernel(cols_ref, w_ref, b_ref, out_ref):
    # cols: (1, Cin*K*K, tile_m) bf16   w: (Cout, Cin*K*K) bf16   b: (Cout, 1) f32
    # out:  (1, Cout, tile_m) bf16  -- lane-dense, channels-first straight out of the kernel.
    acc = jax.lax.dot_general(
        w_ref[...], cols_ref[0],
        (((1,), (0,)), ((), ())),
        preferred_element_type=jnp.float32)
    out_ref[0] = (acc + b_ref[...]).astype(out_ref.dtype)


def _make_fused_kernel(masked):
    """Fused bilinear upsample + norm_along_dim(dim=1) [+ mask] + squared-error partial sum."""

    def kernel(pf_ref, gf_ref, ah_ref, awt_ref, *rest):
        if masked:
            pm_ref, gm_ref, out_ref = rest
        else:
            (out_ref,) = rest

        ah = ah_ref[...]                       # (tile_h, Ho) bf16
        awt = awt_ref[...]                     # (Wo, W)     bf16
        tile_h, ho = ah.shape
        wo, w_out = awt.shape
        c = pf_ref.shape[1]
        ah_b = jnp.broadcast_to(ah[None], (c, tile_h, ho))   # hoisted once per step

        def upsample(f):                       # f: (C, Ho, Wo) bf16
            # H-interp first (only needs this row tile): channel-batched bf16 GEMM.
            q = jax.lax.dot_general(
                ah_b, f, (((2,), (1,)), ((0,), (0,))),
                preferred_element_type=jnp.float32)           # (C, tile_h, Wo) f32
            # W-interp second, on the small tile only (nothing recomputed across tiles).
            q = q.reshape(c * tile_h, wo).astype(jnp.bfloat16)
            r = jnp.dot(q, awt, preferred_element_type=jnp.float32)   # (C*tile_h, W)
            return r.reshape(c, tile_h, w_out)

        def channel_norm(x):
            # norm_along_dim(dim=1); like the PyTorch reference this assumes the per-pixel
            # channel max of (x - min) is nonzero (no epsilon added).
            x = x - jnp.min(x, axis=0, keepdims=True)
            return x * pl.reciprocal(jnp.max(x, axis=0, keepdims=True), approx=True)

        p = channel_norm(upsample(pf_ref[0]))
        g = channel_norm(upsample(gf_ref[0]))
        if masked:
            p = p * pm_ref[0, 0][None, :, :]
            g = g * gm_ref[0, 0][None, :, :]
        d = p - g

        # Channel-first reduction (VPU adds across C slabs), then one slab reduce (XLU).
        e = jnp.sum(d * d, axis=0)                       # (tile_h, W)
        total = jnp.sum(e, axis=1, keepdims=True)        # lane reduce
        total = jnp.sum(total, axis=0, keepdims=True)    # sublane reduce -> (1, 1)
        out_ref[...] = total.reshape(1, 1, 1, 1)

    return kernel


# ------------------------------ wrappers (glue) ----------------------------------

def conv2d_stride2_pallas(x, w, b):
    """x: (B, Cin, H, W) f32, w: (Cout, Cin, 3, 3), b: (Cout,) -> ((B, Cout, Ho*Wo) bf16, Ho, Wo)."""
    B, Cin, H, W = x.shape
    Cout, _, K, _ = w.shape
    pad, stride = 1, 2
    Ho = (H + 2 * pad - K) // stride + 1
    Wo = (W + 2 * pad - K) // stride + 1
    M = Ho * Wo

    xp = jnp.pad(x, ((0, 0), (0, 0), (pad, pad), (pad, pad)))
    # im2col directly in (B, Cin*K*K, M) orientation (no transpose), built in bf16 so the
    # inflated cols round trip is half the bytes of f32.
    patches = [xp[:, :, di:di + stride * Ho:stride, dj:dj + stride * Wo:stride]
               for di in range(K) for dj in range(K)]
    cols = jnp.stack(patches, axis=2).reshape(B, Cin * K * K, M).astype(jnp.bfloat16)
    w2 = w.reshape(Cout, Cin * K * K).astype(jnp.bfloat16)
    b2 = b.reshape(Cout, 1).astype(jnp.float32)

    tm = _choose_tile(M, 8192, 128)
    out = pl.pallas_call(
        _conv_matmul_kernel,
        out_shape=jax.ShapeDtypeStruct((B, Cout, M), jnp.bfloat16),
        grid=(B, M // tm),
        in_specs=[
            pl.BlockSpec((1, Cin * K * K, tm), lambda bi, mi: (bi, 0, mi)),
            pl.BlockSpec((Cout, Cin * K * K), lambda bi, mi: (0, 0)),
            pl.BlockSpec((Cout, 1), lambda bi, mi: (0, 0)),
        ],
        out_specs=pl.BlockSpec((1, Cout, tm), lambda bi, mi: (bi, 0, mi)),
        compiler_params=_mosaic_params(("parallel", "parallel")),
    )(cols, w2, b2)
    return out, Ho, Wo


def _bilinear_matrix(out_size, in_size):
    """Row-interp matrix matching F.interpolate(mode='bilinear', align_corners=False)."""
    i = np.arange(out_size, dtype=np.float64)
    src = (i + 0.5) * (in_size / out_size) - 0.5
    src = np.clip(src, 0.0, None)
    i0 = np.minimum(np.floor(src).astype(np.int64), in_size - 1)
    i1 = np.minimum(i0 + 1, in_size - 1)
    w1 = src - i0
    w0 = 1.0 - w1
    m = np.zeros((out_size, in_size), dtype=np.float32)
    m[np.arange(out_size), i0] += w0
    m[np.arange(out_size), i1] += w1
    return jnp.asarray(m)


def restyle_perceptual_loss_feat(pred, gt, conv_w, conv_b, pred_masks=None, gt_masks=None):
    """Equivalent of RestylePerceptualLoss.forward(pred, gt, mode='feat', feature_maps=[8]).

    pred, gt: (N, H, W, 3) float32; masks: (1, N, H, W) float32 or None.
    """
    N, H, W, _ = pred.shape
    C = conv_w.shape[0]

    pred_nchw = jnp.transpose(pred, (0, 3, 1, 2))
    gt_nchw = jnp.transpose(gt, (0, 3, 1, 2))
    x = jnp.concatenate([pred_nchw, gt_nchw], axis=0)          # pred+gt, one conv call

    # synthetic encoder: features[8] = conv3x3/stride2 of the input (channels-first, bf16)
    feats, Ho, Wo = conv2d_stride2_pallas(x, conv_w, conv_b)   # (2N, C, Ho*Wo) bf16
    feats = feats.reshape(2 * N, C, Ho, Wo)                    # free reshape; lane-dense layout

    ah = _bilinear_matrix(H, Ho).astype(jnp.bfloat16)          # (H, Ho)
    awt = _bilinear_matrix(W, Wo).T.astype(jnp.bfloat16)       # (Wo, W)

    masked = (pred_masks is not None) or (gt_masks is not None)
    tile_h = _pick_h_tile(H, W, C, Ho, Wo, masked)
    n_t = H // tile_h

    in_specs = [
        pl.BlockSpec((1, C, Ho, Wo), lambda n, t: (n, 0, 0, 0)),       # pred features
        pl.BlockSpec((1, C, Ho, Wo), lambda n, t: (n + N, 0, 0, 0)),   # gt features
        pl.BlockSpec((tile_h, Ho), lambda n, t: (t, 0)),               # Ah rows for this tile
        pl.BlockSpec((Wo, W), lambda n, t: (0, 0)),                    # Aw^T
    ]
    args = [feats, feats, ah, awt]
    if masked:
        # crit(): mask.squeeze(0).unsqueeze(1)
        pm = (jnp.ones((N, 1, H, W), jnp.float32) if pred_masks is None
              else pred_masks[0][:, None].astype(jnp.float32))
        gm = (jnp.ones((N, 1, H, W), jnp.float32) if gt_masks is None
              else gt_masks[0][:, None].astype(jnp.float32))
        in_specs += [
            pl.BlockSpec((1, 1, tile_h, W), lambda n, t: (n, 0, t, 0)),
            pl.BlockSpec((1, 1, tile_h, W), lambda n, t: (n, 0, t, 0)),
        ]
        args += [pm, gm]

    # Per-(image, row-tile) partial sums -> both grid axes are parallel (megacore friendly);
    # the final tiny reduction runs in JAX.
    partial = pl.pallas_call(
        _make_fused_kernel(masked),
        out_shape=jax.ShapeDtypeStruct((N, n_t, 1, 1), jnp.float32),
        grid=(N, n_t),
        in_specs=in_specs,
        out_specs=pl.BlockSpec((1, 1, 1, 1), lambda n, t: (n, t, 0, 0)),
        compiler_params=_mosaic_params(("parallel", "parallel")),
    )(*args)

    # MSELoss(mean) over the (N, C, H, W) upsampled feature tensor.
    return jnp.sum(partial) / float(N * C * H * W)


# ------------------------------ plain-JAX reference ------------------------------

def _reference(pred, gt, conv_w, conv_b, pred_masks, gt_masks):
    N, H, W, _ = pred.shape

    def enc(x):
        x = jnp.transpose(x, (0, 3, 1, 2))
        y = jax.lax.conv_general_dilated(
            x, conv_w, (2, 2), ((1, 1), (1, 1)),
            dimension_numbers=('NCHW', 'OIHW', 'NCHW'))
        return y + conv_b[None, :, None, None]

    def up(f):
        ah = _bilinear_matrix(H, f.shape[2])
        aw = _bilinear_matrix(W, f.shape[3])
        return jnp.einsum('oh,nchw,pw->ncop', ah, f, aw)

    def norm(x):
        x = x - x.min(axis=1, keepdims=True)
        return x / x.max(axis=1, keepdims=True)

    pf = norm(up(enc(pred)))
    gf = norm(up(enc(gt)))
    if pred_masks is not None:
        pf = pf * pred_masks[0][:, None]
    if gt_masks is not None:
        gf = gf * gt_masks[0][:, None]
    return jnp.mean((pf - gf) ** 2)


# ------------------------------------ main ----------------------------------------

if __name__ == "__main__":
    N, H, W = 2, 16, 16
    C_IN, C_FEAT, K = 3, 8, 3

    key = jax.random.PRNGKey(0)
    k_pred, k_gt, k_w, k_b, k_pm, k_gm = jax.random.split(key, 6)

    pred = jax.random.uniform(k_pred, (N, H, W, C_IN), dtype=jnp.float32)
    gt = jax.random.uniform(k_gt, (N, H, W, C_IN), dtype=jnp.float32)
    pred_masks = (jax.random.uniform(k_pm, (1, N, H, W)) > 0.3).astype(jnp.float32)
    gt_masks = (jax.random.uniform(k_gm, (1, N, H, W)) > 0.3).astype(jnp.float32)

    # deterministic synthetic encoder parameters (no checkpoint loading)
    conv_w = 0.1 * jax.random.normal(k_w, (C_FEAT, C_IN, K, K), dtype=jnp.float32)
    conv_b = 0.05 * jax.random.normal(k_b, (C_FEAT,), dtype=jnp.float32)

    # Masked path (dedicated kernel variant).
    loss_m = jax.block_until_ready(
        restyle_perceptual_loss_feat(pred, gt, conv_w, conv_b, pred_masks, gt_masks))
    ref_m = jax.block_until_ready(_reference(pred, gt, conv_w, conv_b, pred_masks, gt_masks))

    # Unmasked path (no ones-mask materialization / DMA).
    loss_u = jax.block_until_ready(restyle_perceptual_loss_feat(pred, gt, conv_w, conv_b))
    ref_u = jax.block_until_ready(_reference(pred, gt, conv_w, conv_b, None, None))

    # Tolerance reflects bf16 matmul operands + the EUP approx reciprocal in the norm;
    # the f32 reference is the module's exact math.
    for name, got, ref in (("masked", loss_m, ref_m), ("unmasked", loss_u, ref_u)):
        if not np.allclose(np.asarray(got), np.asarray(ref), rtol=2e-2, atol=1e-4):
            raise AssertionError(f"{name}: Pallas loss {got} != reference {ref}")

    print("KERNEL_OK")
</pallas_src>

<mosaic_0001>
module attributes {stable_mosaic.version = 11 : i64} {
  func.func @_conv_matmul_kernel(%arg0: i32, %arg1: i32, %arg2: memref<1x27x64xbf16, #tpu.memory_space<vmem>>, %arg3: memref<8x27xbf16, #tpu.memory_space<vmem>>, %arg4: memref<8x1xf32, #tpu.memory_space<vmem>>, %arg5: memref<1x8x64xbf16, #tpu.memory_space<vmem>>) attributes {dimension_semantics = [#tpu.dimension_semantics<parallel>, #tpu.dimension_semantics<parallel>], iteration_bounds = array<i64: 4, 1>, scalar_prefetch = 0 : i64, scratch_operands = 0 : i64, tpu.core_type = #tpu.core_type<tc>, window_params = [{transform_indices = @transform_0, window_bounds = array<i64: 1, 27, 64>}, {pipeline_mode = #tpu.pipeline_mode<synchronous>, transform_indices = @transform_1, window_bounds = array<i64: 8, 27>}, {pipeline_mode = #tpu.pipeline_mode<synchronous>, transform_indices = @transform_2, window_bounds = array<i64: 8, 1>}, {transform_indices = @transform_3, window_bounds = array<i64: 1, 8, 64>}]} {
    %c0 = arith.constant 0 : index
    %c0_0 = arith.constant 0 : index
    %0 = vector.load %arg3[%c0, %c0_0] : memref<8x27xbf16, #tpu.memory_space<vmem>>, vector<8x27xbf16>
    %c0_1 = arith.constant 0 : index
    %c0_2 = arith.constant 0 : index
    %c0_3 = arith.constant 0 : index
    %1 = vector.load %arg2[%c0_1, %c0_2, %c0_3] : memref<1x27x64xbf16, #tpu.memory_space<vmem>>, vector<1x27x64xbf16>
    %2 = vector.shape_cast %1 : vector<1x27x64xbf16> to vector<27x64xbf16>
    %cst = arith.constant dense<0.000000e+00> : vector<8x64xf32>
    %3 = tpu.matmul %0, %2, %cst {dimension_numbers = #tpu.dot_dimension_numbers<[1], [0], [0], [1], [0, 0, 1, 1], [], []>} : vector<8x27xbf16>, vector<27x64xbf16>, vector<8x64xf32> -> vector<8x64xf32>
    %c0_4 = arith.constant 0 : index
    %c0_5 = arith.constant 0 : index
    %4 = vector.load %arg4[%c0_4, %c0_5] : memref<8x1xf32, #tpu.memory_space<vmem>>, vector<8x1xf32>
    %5 = vector.broadcast %4 : vector<8x1xf32> to vector<8x64xf32>
    %6 = arith.addf %3, %5 : vector<8x64xf32>
    %7 = arith.truncf %6 : vector<8x64xf32> to vector<8x64xbf16>
    %c0_6 = arith.constant 0 : index
    %c0_7 = arith.constant 0 : index
    %c0_8 = arith.constant 0 : index
    %8 = vector.load %arg5[%c0_6, %c0_7, %c0_8] : memref<1x8x64xbf16, #tpu.memory_space<vmem>>, vector<1x8x64xbf16>
    %9 = vector.shape_cast %8 : vector<1x8x64xbf16> to vector<8x64xbf16>
    %10 = vector.shape_cast %7 : vector<8x64xbf16> to vector<1x8x64xbf16>
    tpu.vector_store %arg5[%c0_6, %c0_7, %c0_8], %10 {strides = array<i32>} : memref<1x8x64xbf16, #tpu.memory_space<vmem>>, vector<1x8x64xbf16>,
    return
  }
  func.func @transform_0(%arg0: i32, %arg1: i32) -> (i32, i32, i32) {
    %c0_i32 = arith.constant 0 : i32
    %c0_i32_0 = arith.constant 0 : i32
    return %arg0, %c0_i32, %arg1 : i32, i32, i32
  }
  func.func @transform_1(%arg0: i32, %arg1: i32) -> (i32, i32) {
    %c0_i32 = arith.constant 0 : i32
    %c0_i32_0 = arith.constant 0 : i32
    %c0_i32_1 = arith.constant 0 : i32
    return %c0_i32, %c0_i32_0 : i32, i32
  }
  func.func @transform_2(%arg0: i32, %arg1: i32) -> (i32, i32) {
    %c0_i32 = arith.constant 0 : i32
    %c0_i32_0 = arith.constant 0 : i32
    %c0_i32_1 = arith.constant 0 : i32
    return %c0_i32, %c0_i32_0 : i32, i32
  }
  func.func @transform_3(%arg0: i32, %arg1: i32) -> (i32, i32, i32) {
    %c0_i32 = arith.constant 0 : i32
    %c0_i32_0 = arith.constant 0 : i32
    return %arg0, %c0_i32, %arg1 : i32, i32, i32
  }
}

</mosaic_0001>

<bundles_post_ra>
// kernel: tpu_custom_call.1
= control target key start
LH: loop header
LB: loop body
LE: loop exit
PB: predicated region body
PF: predicated region fallthrough
CT: control target
= control target key end

     0   :  { %8 = vsyncpa [#allocation3], 0  ;;  %s672_s0 = inlined_call_operand.vmem [shape: bf16[4,27,64], index: 0, kind: input, shape index: {}]   ;;  %s673_s1 = inlined_call_operand.vmem [shape: bf16[8,27], index: 1, kind: input, shape index: {}]   ;;  %s674_s2 = inlined_call_operand.vmem [shape: f32[8,1], index: 2, kind: input, shape index: {}]   ;;  %s675_s3 = inlined_call_operand.hbm [shape: bf16[4,8,64], index: 3, kind: output, shape index: {}]  }
   0x1   :  { %10 = vsyncpa [#allocation3 + $0x1], 0  ;;  %s554_s12 = smov 0   ;;  %s556_s13 = smov 0  }
   0x2   :  { %s558_s14 = smov 0   ;;  %s560_s15 = smov 0  }
   0x3   :  { %s562_s16 = smov 0   ;;  %s564_s17 = smov 0  }
   0x4 LB: > { %s360_s18 = sadd.s32 4294967295, %s527_s17   ;;  %s361_s19 = sadd.s32 4294967294, %s527_s17   ;;  %s527_s17 = sphi %s564_s17, %s16_s17   ;;  %s523_s16 = sphi %s562_s16, %s682_s16   ;;  %s519_s15 = sphi %s560_s15, %s681_s15   ;;  %s515_s14 = sphi %s558_s14, %s680_s14   ;;  %s511_s13 = sphi %s556_s13, %s679_s13   ;;  %s507_s12 = sphi %s554_s12, %s678_s12  }
   0x5   : > { %s28_s20 = sadd.s32 1, %s523_s16  ;;  %s107_s21 = sadd.s32 1, %s515_s14 }
   0x6   : > { %p30_p0 = scmp.ge.s32.totalorder %s28_s20, 4  ;;  %p117_p1 = scmp.ne.s32.totalorder %s515_s14, %s511_s13 }
   0x7   : > { %p118_p2 = scmp.eq.s32.totalorder %s360_s18, 3  ;;  %p123_p3 = scmp.ne.s32.totalorder %s511_s13, %s507_s12 }
   0x8   : > { %s684_s20 = smov (%p30_p0, %s28_s20), 0  ;;  %p124_p5 = scmp.eq.s32.totalorder %s361_s19, 3 }
   0x9   : > { %p594_p4 = por %p118_p2, %p117_p1  ;;  %s102_s23 = ssub.s32 %s523_s16, %s684_s20 }
   0xa   : > { %p364_p6 = scmp.ge.s32.totalorder %s527_s17, 1  ;;  %p105_p7 = scmp.eq.s32.totalorder %s102_s23, 0 }
   0xb   : > { %p601_p8 = por %p124_p5, %p123_p3  ;;  %p159_p9 = scmp.lt.s32.totalorder %s527_s17, 5 }
   0xc   : > { %s607_s25 = scalar_select %p105_p7, %s515_s14, %s107_s21  }
   0xd   : > { %p160_p10 = pnand %p364_p6, %p159_p9 }
   0xe   : > { %p186_p11 = scmp.lt.s32.totalorder (!%p160_p10), %s519_s15, 3  ;;  %vm221_vm0 = vcmask (!%p160_p10), 1044480   ;;  %v200_v0 = vld [vmem:[%s674_s2] sm:$0xff] (!%p160_p10)  ;;  %v529_v1 = vmov (!%p160_p10), 0.0   ;;  %vm530_vm1 = vmmov (!%p160_p10), 0   ;;  %v531_v2 = vmov (!%p160_p10), 0  }
   0xf   : > { %163 = sbr.rel (%p160_p10) target bundleno = 264 (0x108), region = 32  ;;  %379 = vmatprep.subr.bf16.mxu0 (!%p160_p10), %v529_v1  ;;  %383 = vmatprep.mubr.msk.bf16.mxu0 (!%p160_p10), %vm530_vm1, %v529_v1  ;;  %vm222_vm2 = vcmask (!%p160_p10), 1045504   ;;  %v532_v3 = vmov (!%p160_p10), 65535   ;;  %v195_v9 = vld [vmem:[%s673_s1] sm:$0xf] (!%p160_p10)  ;;  %vm217_vm3 = vcmask (!%p160_p10), 220160  }
  0x10   : > { %446 = vset.pattern.permute.xlu0 (!%p160_p10), %v531_v2  ;;  %v223_v4 = vsel (!%p160_p10), %vm221_vm0, 4294967295, %v532_v3  ;;  %s183_s8 = sand.u32 (!%p160_p10), 1, %s511_s13   ;;  %s372_s10 = sshll.u32 (!%p160_p10), %s519_s15, 6  ;;  %vm269_vm4 = vcmask (!%p160_p10), 519168  }
  0x11   : > { %203 = vperm.xlu0 (!%p160_p10), %446, %v200_v0   ;;  %v224_v6 = vsel (!%p160_p10), %vm222_vm2, %v223_v4, 0  ;;  %s365_s9 = sshll.u32 (!%p160_p10), %s183_s8, 2  ;;  %s625_s23 = scalar_lea.hbm (!%p160_p10), %s675_s3, %s372_s10 }
  0x12   : > { %s185_s11 = scalar_lea.vmem (!%p160_p10), [#allocation2], %s365_s9  ;;  %s533_s27 = smov (!%p160_p10), [#allocation2]  }
  0x13   : > { %s286_s18 = sshll.u32 (!%p160_p10), %s185_s11, 4  ;;  %s627_s18 = int_to_ptr.vmem [resolvable:$true] %s286_s18 }
  0x14   : > { %s449_s26 = scalar_lea.vmem (!%p160_p10), %s627_s18, 64 }
  0x15   : > { %p450_p12 = scmp.ne.s32.totalorder (!%p160_p10), %s627_s18, %s449_s26 }
  0x16   : > { %s187_s28 = scalar_select %p186_p11, %s519_s15, 3 }
  0x17   : > { %s272_s15 = scalar_lea.sflag [#allocation3], %s183_s8  ;;  %p451_p13 = pnand %p450_p12, %p594_p4 }
  0x18   : > { %s375_s29 = sshll.u32 %s187_s28, 4  ;;  %s453_s28 = sshll.u32 %s533_s27, 4  ;;  %s454_s28 = int_to_ptr.vmem [resolvable:$false] %s453_s28 }
  0x19   : > { %s193_s5 = scalar_lea.vmem %s672_s0, %s375_s29  ;;  %p452_p0 = pneg %p451_p13 }
  0x1a   : > { %v447_v5 = vld [vmem:[%s193_s5] sm:$0xff]   ;;  %v448_v7 = vld [vmem:[%s193_s5 + $0x8] sm:$0x3f]   ;;  %s455_s29 = scalar_lea.vmem %s454_s28, 128  ;;  %p456_p1 = scmp.lt.s32.totalorder %s627_s18, %s454_s28 }
  0x1b   : > { %380 = vmatpush3.bf16.msra.mxu0 %v447_v5  ;;  %v226_v8 = vand.u32 %v448_v7, %v224_v6  ;;  %p457_p2 = scmp.lt.s32.totalorder %s455_s29, %s449_s26 }
  0x1c   : > { %381 = vmatprep.subr.bf16.mxu0 %v529_v1 }
  0x1d   : > { %p458_p3 = por %p457_p2, %p456_p1 }
  0x1f   : > { %382 = vmatpush3.bf16.msra.mxu0 %v226_v8  ;;  %p459_p5 = pnand %p458_p3, %p452_p0 }
  0x22   : > { %384 = vmatmul.mubr.msk.bf16.vlgmr.msra.gmra.mrb[0].mxu0 %vm217_vm3, %v195_v9 }
  0x90   : > { %v204_v10 = vpop.permute.xlu0 %203 }
  0xf5   : > { %v262_v11 = vpop.f32.mrb[0].mxu0 }
  0xf6   : > { %v263_v12 = vadd.f32 %v262_v11, %v204_v10  ;;  %v385_v13 = vpop.f32.mrb[1].mxu0 }
  0xf7   : > { %v265_v14 = vpop.f32.mrb[2].mxu0 }
  0xf8   : > { %v268_v15 = vpack.c.bf16 %v263_v12, %v263_v12  ;;  %v386_v16 = vpop.f32.mrb[3].mxu0 }
  0xfa   : > { %270 = vst.msk [vmem:[%s185_s11] sm:$0xf] %vm269_vm4, %v268_v15 }
  0xfb   : > { %462 = shalt.err (!%p459_p5)
}
  0xfc   : > { %s463_s30 = scalar_lea.hbm %s625_s23, 64  ;;  %s467_s6 = scalar_lea.hbm %s675_s3, 256 }
  0xfd   : > { %p464_p6 = scmp.ne.s32.totalorder %s625_s23, %s463_s30  ;;  %p468_p10 = scmp.lt.u32.totalorder %s625_s23, %s675_s3 }
  0xfe   : > { %p469_p11 = scmp.lt.u32.totalorder %s467_s6, %s463_s30  ;;  %p471_p13 = scmp.lt.u32.totalorder %s463_s30, %s625_s23 }
  0xff   : > { %p465_p7 = pnand %p464_p6, %p594_p4 }
 0x100   : > { %p470_p12 = por %p469_p11, %p468_p10 }
 0x101   : > { %p466_p9 = pneg %p465_p7 }
 0x102   : > { %p472_p0 = por %p471_p13, %p470_p12 }
 0x104   : > { %p473_p1 = pnand %p472_p0, %p466_p9 }
 0x106   : > { %476 = shalt.err (!%p473_p1)
}
 0x107   : > { %387 = dma.vmem_to_hbm [thread:$0]  (%p594_p4), %s627_s18, 64, %s625_s23, %s272_s15  }
 0x108 PF: > { %p393_p2 = scmp.ge.s32.totalorder %s527_s17, 2  ;;  %s298_s9 = sand.u32 1, %s507_s12  }
 0x109   : > { %s299_s10 = scalar_lea.sflag [#allocation3], %s298_s9 }
 0x10a   : > { %p390_p3 = pnand %p393_p2, %p601_p8 }
 0x10c   : > { %502 = dma.done.wait (!%p390_p3), %s299_s10, 64  }
 0x10d   : > { %504 = vsyncadd (!%p390_p3), %s299_s10, 4294967232  ;;  %s16_s17 = sadd.s32 1, %s527_s17   ;;  %s678_s12 = smov %s511_s13 }
 0x10e   : > { %p13_p5 = scmp.ge.s32.totalorder %s16_s17, 6   ;;  %s679_s13 = smov %s515_s14 }
 0x10f   : > { %s680_s14 = smov %s607_s25  ;;  %s681_s15 = smov %s523_s16 }
 0x110   : > { %s682_s16 = smov %s684_s20  ;;  %15 = sbr.rel (!%p13_p5) target bundleno = 4 (0x4), region = 67 }
 0x117   :  { %304 = vsyncpa [#allocation3], 1 }
 0x118   :  { %306 = vsyncpa [#allocation3 + $0x1], 1 }

</bundles_post_ra>
